<compile_context>
chip_gen: v7x
topology: tpu7x:2x2x1
jax: 0.10.0
libtpu: 0.0.40
codegen_flags: <defaults>
</compile_context>

<pallas_src>
import functools

import jax
import jax.numpy as jnp
from jax import lax
from jax.experimental import pallas as pl
from jax.experimental.pallas import tpu as pltpu

EPS = 1e-5


# --------------------------------------------------------------------------
# Pass 1 kernel: conv (banded matmuls) + fused 2x2 max/min pool + BN partials
# --------------------------------------------------------------------------
def _conv_pool_stats_kernel(x_ref, b_ref, mm_ref, st_ref, y_ref, *, G, H, half):
    # x_ref : [G, H+2, L_in]  bf16 padded images, lanes = (col, C_in)
    # b_ref : [3, L_in, 2*half] bf16 banded weights, out lanes = (w-parity, wp, c)
    # mm_ref: [G*Hp, 2*half]  f32 per-2x2-window [max | min] of the raw conv
    # st_ref: [1, 2, 2*half]  f32 per-block partial [sum ; sum-of-squares]
    # y_ref : [G*H, 2*half]   f32 scratch holding the raw conv output
    L_in = x_ref.shape[-1]
    Hp = H // 2
    GH = G * H
    dot = functools.partial(jnp.dot, preferred_element_type=jnp.float32)

    # Three kernel-row taps, each ONE matmul with M = G*H rows (all images of
    # the block flattened into M) — keeps the MXU rows full and amortizes the
    # per-step pipeline overhead.
    t0 = x_ref[:, 0:H, :].reshape(GH, L_in)
    t1 = x_ref[:, 1:H + 1, :].reshape(GH, L_in)
    t2 = x_ref[:, 2:H + 2, :].reshape(GH, L_in)
    y = dot(t0, b_ref[0]) + dot(t1, b_ref[1]) + dot(t2, b_ref[2])  # [GH, 2*half] f32

    # BN batch statistics: per-lane partial sum / sum-of-squares for THIS block
    # only (reduced across blocks in the wrapper) -> grid axis can be "parallel".
    # Note: single-pass E[y^2]-E[y]^2 in f32 is fine at these magnitudes.
    s = jnp.sum(y, axis=0, keepdims=True)
    ss = jnp.sum(y * y, axis=0, keepdims=True)
    st_ref[0] = jnp.concatenate([s, ss], axis=0)                   # [2, 2*half]

    # Fused 2x2 / stride-2 pooling of the raw conv output.  Column pooling is
    # an elementwise max/min of the two contiguous lane halves (weights are
    # w-parity-major); row pooling uses stride-2 sublane reads of the scratch
    # (even vs odd output rows).  Only the [max | min] (128 lanes, unmasked
    # store) goes back to HBM; BN's sign decides max vs min later.
    y_ref[...] = y
    y_e = y_ref[pl.ds(0, G * Hp, stride=2), :]
    y_o = y_ref[pl.ds(1, G * Hp, stride=2), :]
    wmax = jnp.maximum(jnp.maximum(y_e[:, :half], y_e[:, half:]),
                       jnp.maximum(y_o[:, :half], y_o[:, half:]))
    wmin = jnp.minimum(jnp.minimum(y_e[:, :half], y_e[:, half:]),
                       jnp.minimum(y_o[:, :half], y_o[:, half:]))
    mm_ref[...] = jnp.concatenate([wmax, wmin], axis=1)


# --------------------------------------------------------------------------
# Banded conv weights
# --------------------------------------------------------------------------
def _banded_weights(w_oihw, W):
    """[C_out, C_in, 3, 3] -> [3, (W+2)*C_in, W*C_out] banded conv matrices.

    Output columns are ordered (w-parity, wp, c) so the 2x2 W-pooling becomes a
    contiguous lane-half split inside the kernel.
    """
    C_out, C_in, kh, kw = w_oihw.shape
    assert kh == 3 and kw == 3, "ConvBlock uses kernel_size=3, padding=1"
    w_taps = jnp.transpose(w_oihw, (2, 3, 1, 0))            # [kh, kw, C_in, C_out]
    cols = jnp.arange(W)
    perm = jnp.concatenate([jnp.arange(0, W, 2), jnp.arange(1, W, 2)])
    mats = []
    for i in range(kh):
        b4 = jnp.zeros((W + 2, C_in, W, C_out), jnp.float32)
        for j in range(kw):
            # padded column w+j feeds output column w with tap (i, j)
            b4 = b4.at[cols + j, :, cols, :].add(w_taps[i, j][None, :, :])
        b4 = b4[:, :, perm, :]                               # parity-major out cols
        mats.append(b4.reshape((W + 2) * C_in, W * C_out))
    return jnp.stack(mats, axis=0)


# --------------------------------------------------------------------------
# Block-size / VMEM-limit selection (per TPU generation)
# --------------------------------------------------------------------------
def _pick_block_and_vmem(N, H, Hp, L_in, half):
    def rup(n, m):
        return -(-n // m) * m

    try:
        cap = int(getattr(pltpu.get_tpu_info(), "vmem_capacity_bytes", 128 << 20))
    except Exception:  # no TPU info available -> conservative default
        cap = 64 << 20
    budget = min(int(0.40 * cap), 48 << 20)  # safe on v7x (64 MiB), roomy on v5e/v6e

    lanes = rup(2 * half, 128)

    def working_set(g):
        x_b = g * rup(H + 2, 16) * rup(L_in, 128) * 2        # bf16 input block
        w_b = 3 * rup(L_in, 8) * lanes * 2                   # resident banded weights
        mm_b = rup(g * Hp, 8) * lanes * 4                    # f32 pooled [max|min]
        y_b = rup(g * H, 8) * lanes * 4                      # f32 conv scratch
        return 2 * (x_b + mm_b) + w_b + 5 * y_b              # dbl-buffered I/O + temps

    G = 1
    for cand in range(N, 0, -1):
        if N % cand:
            continue
        if (N // cand) != 1 and (cand * Hp) % 8 != 0:        # (8,128) rule on mm block
            continue
        if working_set(cand) <= budget:
            G = cand
            break
    vmem_limit = int(min(max(2 * working_set(G), 32 << 20), int(0.70 * cap)))
    return G, vmem_limit


# --------------------------------------------------------------------------
# Wrapper
# --------------------------------------------------------------------------
def conv_block_forward(x_nchw, w_oihw, bias, gamma, beta):
    """ConvBlock forward (kernel_size=3, max_pool=True, max_pool_factor=1.0)."""
    del bias  # train-mode BN subtracts the batch mean -> conv bias cancels exactly
    N, C_in, H, W = x_nchw.shape
    C_out = w_oihw.shape[0]
    assert H % 2 == 0 and W % 2 == 0
    Hp, Wp = H // 2, W // 2
    half = Wp * C_out                    # pooled lane width
    L_in = (W + 2) * C_in

    # Single HBM layout pass: NCHW -> NHWC, pad H/W by 1, fold (col, C_in) into
    # the lane axis (free reshape), cast to bf16 for the MXU.
    x = jnp.transpose(x_nchw, (0, 2, 3, 1))
    xp = jnp.pad(x, ((0, 0), (1, 1), (1, 1), (0, 0)))
    xp = xp.reshape(N, H + 2, L_in).astype(jnp.bfloat16)

    bw = _banded_weights(w_oihw, W).astype(jnp.bfloat16)     # [3, L_in, 2*half]

    G, vmem_limit = _pick_block_and_vmem(N, H, Hp, L_in, half)
    NB = N // G

    kernel = functools.partial(_conv_pool_stats_kernel, G=G, H=H, half=half)
    mm, stats = pl.pallas_call(
        kernel,
        out_shape=(jax.ShapeDtypeStruct((N * Hp, 2 * half), jnp.float32),
                   jax.ShapeDtypeStruct((NB, 2, 2 * half), jnp.float32)),
        grid_spec=pltpu.PrefetchScalarGridSpec(
            num_scalar_prefetch=0,
            grid=(NB,),
            in_specs=[
                # G whole padded images per step (no halo overlap between steps).
                pl.BlockSpec((G, H + 2, L_in), lambda g: (g, 0, 0)),
                # Banded weights: grid-invariant -> resident in VMEM.
                pl.BlockSpec((3, L_in, 2 * half), lambda g: (0, 0, 0)),
            ],
            out_specs=[
                pl.BlockSpec((G * Hp, 2 * half), lambda g: (g, 0)),
                pl.BlockSpec((1, 2, 2 * half), lambda g: (g, 0, 0)),
            ],
            scratch_shapes=[pltpu.VMEM((G * H, 2 * half), jnp.float32)],
        ),
        compiler_params=pltpu.CompilerParams(
            dimension_semantics=("parallel",),   # per-block partial stats -> safe
            vmem_limit_bytes=vmem_limit),
    )(xp, bw)

    # Epilogue (pure jnp; XLA fuses it with the final transpose): reduce the
    # per-block BN partials, fold gamma/beta into scale/shift, and resolve the
    # pooled max/min by the sign of the folded scale.
    ch = stats.sum(axis=0).reshape(2, 2, Wp, C_out).sum(axis=(1, 2))   # [2, C_out]
    cnt = N * H * W
    mean = ch[0] / cnt
    var = ch[1] / cnt - mean * mean          # biased variance (PyTorch train BN)
    scale = gamma.astype(jnp.float32) * lax.rsqrt(var + EPS)
    shift = beta.astype(jnp.float32) - mean * scale

    wmax = mm[:, :half].reshape(N, Hp, Wp, C_out)
    wmin = mm[:, half:].reshape(N, Hp, Wp, C_out)
    # maxpool(relu(s*y + t)) over a window == relu(s*max(y)+t) if s > 0 else
    # relu(s*min(y)+t)  (exact: the affine BN map is monotone per sign of s).
    z = jnp.where(scale > 0, wmax * scale, wmin * scale) + shift
    out = jnp.maximum(z, 0.0)
    return jnp.transpose(out, (0, 3, 1, 2))  # NHWC -> NCHW


# --------------------------------------------------------------------------
# Pure-JAX reference (same forward pass, NCHW, f32)
# --------------------------------------------------------------------------
def reference_forward(x_nchw, w_oihw, bias, gamma, beta):
    y = lax.conv_general_dilated(
        x_nchw, w_oihw, window_strides=(1, 1), padding=((1, 1), (1, 1)),
        dimension_numbers=("NCHW", "OIHW", "NCHW"))
    y = y + bias[None, :, None, None]
    mean = jnp.mean(y, axis=(0, 2, 3), keepdims=True)
    var = jnp.mean((y - mean) ** 2, axis=(0, 2, 3), keepdims=True)
    y = (y - mean) / jnp.sqrt(var + EPS)
    y = y * gamma[None, :, None, None] + beta[None, :, None, None]
    y = jnp.maximum(y, 0.0)
    N, C, H, W = y.shape
    return y.reshape(N, C, H // 2, 2, W // 2, 2).max(axis=(3, 5))


if __name__ == "__main__":
    # Small shapes consistent with the module: batch=2, C_in=4, C_out=8, 16x16.
    N, C_in, C_out, H, W, k = 2, 4, 8, 16, 16, 3

    key = jax.random.PRNGKey(0)
    k_x, k_w, k_g = jax.random.split(key, 3)

    x = jax.random.normal(k_x, (N, C_in, H, W), dtype=jnp.float32)

    # conv weight: xavier_uniform_(gain=1.0); conv bias: zeros (maml_init_)
    fan_in = C_in * k * k
    fan_out = C_out * k * k
    bound = (6.0 / (fan_in + fan_out)) ** 0.5
    w = jax.random.uniform(k_w, (C_out, C_in, k, k), dtype=jnp.float32,
                           minval=-bound, maxval=bound)
    b = jnp.zeros((C_out,), dtype=jnp.float32)
    # BatchNorm: weight ~ U(0,1), bias = 0 (running stats unused in train mode)
    gamma = jax.random.uniform(k_g, (C_out,), dtype=jnp.float32)
    beta = jnp.zeros((C_out,), dtype=jnp.float32)

    fwd = jax.jit(conv_block_forward)
    out = jax.block_until_ready(fwd(x, w, b, gamma, beta))

    ref = reference_forward(x, w, b, gamma, beta)
    assert out.shape == (N, C_out, H // 2, W // 2), out.shape
    # bf16 MXU operands (per perf review) -> compare against the f32 reference
    # at a bf16-appropriate tolerance (BN re-normalizes, outputs are O(1)).
    max_err = float(jnp.max(jnp.abs(out - ref)))
    assert jnp.allclose(out, ref, rtol=3e-2, atol=3e-2), max_err

    print("KERNEL_OK")
</pallas_src>

<mosaic_0001>
module attributes {stable_mosaic.version = 11 : i64} {
  func.func @_conv_pool_stats_kernel(%arg0: i32, %arg1: memref<2x18x72xbf16, #tpu.memory_space<vmem>>, %arg2: memref<3x72x128xbf16, #tpu.memory_space<vmem>>, %arg3: memref<16x128xf32, #tpu.memory_space<vmem>>, %arg4: memref<1x2x128xf32, #tpu.memory_space<vmem>>, %arg5: memref<32x128xf32, #tpu.memory_space<vmem>>) attributes {dimension_semantics = [#tpu.dimension_semantics<parallel>], iteration_bounds = array<i64: 1>, scalar_prefetch = 0 : i64, scratch_operands = 1 : i64, tpu.core_type = #tpu.core_type<tc>, window_params = [{transform_indices = @transform_0, window_bounds = array<i64: 2, 18, 72>}, {pipeline_mode = #tpu.pipeline_mode<synchronous>, transform_indices = @transform_1, window_bounds = array<i64: 3, 72, 128>}, {transform_indices = @transform_2, window_bounds = array<i64: 16, 128>}, {transform_indices = @transform_3, window_bounds = array<i64: 1, 2, 128>}]} {
    %c0 = arith.constant 0 : index
    %c0_0 = arith.constant 0 : index
    %c0_1 = arith.constant 0 : index
    %0 = vector.load %arg1[%c0, %c0_0, %c0_1] : memref<2x18x72xbf16, #tpu.memory_space<vmem>>, vector<2x16x72xbf16>
    %1 = vector.shape_cast %0 : vector<2x16x72xbf16> to vector<32x72xbf16>
    %c0_2 = arith.constant 0 : index
    %c1 = arith.constant 1 : index
    %c0_3 = arith.constant 0 : index
    %2 = vector.load %arg1[%c0_2, %c1, %c0_3] : memref<2x18x72xbf16, #tpu.memory_space<vmem>>, vector<2x16x72xbf16>
    %3 = vector.shape_cast %2 : vector<2x16x72xbf16> to vector<32x72xbf16>
    %c0_4 = arith.constant 0 : index
    %c2 = arith.constant 2 : index
    %c0_5 = arith.constant 0 : index
    %4 = vector.load %arg1[%c0_4, %c2, %c0_5] : memref<2x18x72xbf16, #tpu.memory_space<vmem>>, vector<2x16x72xbf16>
    %5 = vector.shape_cast %4 : vector<2x16x72xbf16> to vector<32x72xbf16>
    %c0_6 = arith.constant 0 : index
    %c0_7 = arith.constant 0 : index
    %c0_8 = arith.constant 0 : index
    %6 = vector.load %arg2[%c0_6, %c0_7, %c0_8] : memref<3x72x128xbf16, #tpu.memory_space<vmem>>, vector<1x72x128xbf16>
    %7 = vector.shape_cast %6 : vector<1x72x128xbf16> to vector<72x128xbf16>
    %cst = arith.constant dense<0.000000e+00> : vector<32x128xf32>
    %8 = tpu.matmul %1, %7, %cst {dimension_numbers = #tpu.dot_dimension_numbers<[1], [0], [0], [1], [0, 0, 1, 1], [], []>} : vector<32x72xbf16>, vector<72x128xbf16>, vector<32x128xf32> -> vector<32x128xf32>
    %c1_9 = arith.constant 1 : index
    %c0_10 = arith.constant 0 : index
    %c0_11 = arith.constant 0 : index
    %9 = vector.load %arg2[%c1_9, %c0_10, %c0_11] : memref<3x72x128xbf16, #tpu.memory_space<vmem>>, vector<1x72x128xbf16>
    %10 = vector.shape_cast %9 : vector<1x72x128xbf16> to vector<72x128xbf16>
    %cst_12 = arith.constant dense<0.000000e+00> : vector<32x128xf32>
    %11 = tpu.matmul %3, %10, %cst_12 {dimension_numbers = #tpu.dot_dimension_numbers<[1], [0], [0], [1], [0, 0, 1, 1], [], []>} : vector<32x72xbf16>, vector<72x128xbf16>, vector<32x128xf32> -> vector<32x128xf32>
    %12 = arith.addf %8, %11 : vector<32x128xf32>
    %c2_13 = arith.constant 2 : index
    %c0_14 = arith.constant 0 : index
    %c0_15 = arith.constant 0 : index
    %13 = vector.load %arg2[%c2_13, %c0_14, %c0_15] : memref<3x72x128xbf16, #tpu.memory_space<vmem>>, vector<1x72x128xbf16>
    %14 = vector.shape_cast %13 : vector<1x72x128xbf16> to vector<72x128xbf16>
    %cst_16 = arith.constant dense<0.000000e+00> : vector<32x128xf32>
    %15 = tpu.matmul %5, %14, %cst_16 {dimension_numbers = #tpu.dot_dimension_numbers<[1], [0], [0], [1], [0, 0, 1, 1], [], []>} : vector<32x72xbf16>, vector<72x128xbf16>, vector<32x128xf32> -> vector<32x128xf32>
    %16 = arith.addf %12, %15 : vector<32x128xf32>
    %cst_17 = arith.constant dense<0.000000e+00> : vector<128xf32>
    %17 = vector.multi_reduction <add>, %16, %cst_17 [0] : vector<32x128xf32> to vector<128xf32>
    %18 = vector.shape_cast %17 : vector<128xf32> to vector<1x128xf32>
    %19 = arith.mulf %16, %16 : vector<32x128xf32>
    %cst_18 = arith.constant dense<0.000000e+00> : vector<128xf32>
    %20 = vector.multi_reduction <add>, %19, %cst_18 [0] : vector<32x128xf32> to vector<128xf32>
    %21 = vector.shape_cast %20 : vector<128xf32> to vector<1x128xf32>
    %22 = tpu.concatenate %18, %21 in 0 : vector<1x128xf32>, vector<1x128xf32> -> vector<2x128xf32>
    %c0_19 = arith.constant 0 : index
    %c0_20 = arith.constant 0 : index
    %c0_21 = arith.constant 0 : index
    %23 = vector.load %arg4[%c0_19, %c0_20, %c0_21] : memref<1x2x128xf32, #tpu.memory_space<vmem>>, vector<1x2x128xf32>
    %24 = vector.shape_cast %23 : vector<1x2x128xf32> to vector<2x128xf32>
    %25 = vector.shape_cast %22 : vector<2x128xf32> to vector<1x2x128xf32>
    tpu.vector_store %arg4[%c0_19, %c0_20, %c0_21], %25 {strides = array<i32>} : memref<1x2x128xf32, #tpu.memory_space<vmem>>, vector<1x2x128xf32>,
    %c0_22 = arith.constant 0 : index
    %c0_23 = arith.constant 0 : index
    %26 = vector.load %arg5[%c0_22, %c0_23] : memref<32x128xf32, #tpu.memory_space<vmem>>, vector<32x128xf32>
    tpu.vector_store %arg5[%c0_22, %c0_23], %16 {strides = array<i32>} : memref<32x128xf32, #tpu.memory_space<vmem>>, vector<32x128xf32>,
    %c0_24 = arith.constant 0 : index
    %c0_25 = arith.constant 0 : index
    %27 = tpu.strided_load %arg5[%c0_24, %c0_25] {strides = array<i32: 2, 1>} : memref<32x128xf32, #tpu.memory_space<vmem>>, vector<16x128xf32>
    %c1_26 = arith.constant 1 : index
    %c0_27 = arith.constant 0 : index
    %28 = tpu.strided_load %arg5[%c1_26, %c0_27] {strides = array<i32: 2, 1>} : memref<32x128xf32, #tpu.memory_space<vmem>>, vector<16x128xf32>
    %29 = vector.extract_strided_slice %27 {offsets = [0, 0], sizes = [16, 64], strides = [1, 1]} : vector<16x128xf32> to vector<16x64xf32>
    %30 = vector.extract_strided_slice %27 {offsets = [0, 64], sizes = [16, 64], strides = [1, 1]} : vector<16x128xf32> to vector<16x64xf32>
    %31 = arith.maximumf %29, %30 : vector<16x64xf32>
    %32 = vector.extract_strided_slice %28 {offsets = [0, 0], sizes = [16, 64], strides = [1, 1]} : vector<16x128xf32> to vector<16x64xf32>
    %33 = vector.extract_strided_slice %28 {offsets = [0, 64], sizes = [16, 64], strides = [1, 1]} : vector<16x128xf32> to vector<16x64xf32>
    %34 = arith.maximumf %32, %33 : vector<16x64xf32>
    %35 = arith.maximumf %31, %34 : vector<16x64xf32>
    %36 = vector.extract_strided_slice %27 {offsets = [0, 0], sizes = [16, 64], strides = [1, 1]} : vector<16x128xf32> to vector<16x64xf32>
    %37 = vector.extract_strided_slice %27 {offsets = [0, 64], sizes = [16, 64], strides = [1, 1]} : vector<16x128xf32> to vector<16x64xf32>
    %38 = arith.minimumf %36, %37 : vector<16x64xf32>
    %39 = vector.extract_strided_slice %28 {offsets = [0, 0], sizes = [16, 64], strides = [1, 1]} : vector<16x128xf32> to vector<16x64xf32>
    %40 = vector.extract_strided_slice %28 {offsets = [0, 64], sizes = [16, 64], strides = [1, 1]} : vector<16x128xf32> to vector<16x64xf32>
    %41 = arith.minimumf %39, %40 : vector<16x64xf32>
    %42 = arith.minimumf %38, %41 : vector<16x64xf32>
    %43 = tpu.concatenate %35, %42 in 1 : vector<16x64xf32>, vector<16x64xf32> -> vector<16x128xf32>
    %c0_28 = arith.constant 0 : index
    %c0_29 = arith.constant 0 : index
    %44 = vector.load %arg3[%c0_28, %c0_29] : memref<16x128xf32, #tpu.memory_space<vmem>>, vector<16x128xf32>
    tpu.vector_store %arg3[%c0_28, %c0_29], %43 {strides = array<i32>} : memref<16x128xf32, #tpu.memory_space<vmem>>, vector<16x128xf32>,
    return
  }
  func.func @transform_0(%arg0: i32) -> (i32, i32, i32) {
    %c0_i32 = arith.constant 0 : i32
    %c0_i32_0 = arith.constant 0 : i32
    %c0_i32_1 = arith.constant 0 : i32
    return %arg0, %c0_i32, %c0_i32_0 : i32, i32, i32
  }
  func.func @transform_1(%arg0: i32) -> (i32, i32, i32) {
    %c0_i32 = arith.constant 0 : i32
    %c0_i32_0 = arith.constant 0 : i32
    %c0_i32_1 = arith.constant 0 : i32
    %c0_i32_2 = arith.constant 0 : i32
    return %c0_i32, %c0_i32_0, %c0_i32_1 : i32, i32, i32
  }
  func.func @transform_2(%arg0: i32) -> (i32, i32) {
    %c0_i32 = arith.constant 0 : i32
    %c0_i32_0 = arith.constant 0 : i32
    return %arg0, %c0_i32 : i32, i32
  }
  func.func @transform_3(%arg0: i32) -> (i32, i32, i32) {
    %c0_i32 = arith.constant 0 : i32
    %c0_i32_0 = arith.constant 0 : i32
    %c0_i32_1 = arith.constant 0 : i32
    return %arg0, %c0_i32, %c0_i32_0 : i32, i32, i32
  }
}

</mosaic_0001>

<bundles_post_ra>
// kernel: conv_block_forward.1
= control target key start
LH: loop header
LB: loop body
LE: loop exit
PB: predicated region body
PF: predicated region fallthrough
CT: control target
= control target key end

     0   :  { %vm148_vm0 = vcmask 588800   ;;  %vm20_vm1 = vsmask.f32 3328  ;;  %vm21_vm2 = vsmask.f32 7440  ;;  %vm155_vm3 = vcmask 1043456   ;;  %s787_s1 = inlined_call_operand.vmem [shape: bf16[3,72,128], index: 1, kind: input, shape index: {}]   ;;  %s788_s0 = inlined_call_operand.vmem [shape: bf16[2,18,72], index: 0, kind: input, shape index: {}]   ;;  %s789_s3 = inlined_call_operand.vmem [shape: f32[1,2,128], index: 3, kind: output, shape index: {1}]   ;;  %s790_s2 = inlined_call_operand.vmem [shape: f32[16,128], index: 2, kind: output, shape index: {0}]  }
   0x1   :  { %v613_v0 = vld [vmem:[%s787_s1] sm:$0xff]   ;;  %v614_v1 = vld [vmem:[%s787_s1 + $0x8] sm:$0xff]   ;;  %v615_v2 = vld [vmem:[%s787_s1 + $0x10] sm:$0xff]   ;;  %vm79_vm4 = vcmask 1042432   ;;  %vm80_vm5 = vcmask 1046532   ;;  %vm428_vm8 = vcmask 1040384  }
   0x2   :  { %573 = vmatprep.subr.bf16.mxu0 %v613_v0  ;;  %v618_v3 = vld [vmem:[%s787_s1 + $0x24] sm:$0xff]   ;;  %v14_v4 = vld [vmem:[%s788_s0] sm:$0xf]  ;;  %v616_v8 = vld [vmem:[%s787_s1 + $0x18] sm:$0xff]   ;;  %vm478_vm9 = vcmask 523264  }
   0x3   :  { %574 = vmatpush3.bf16.msra.mxu0 %v613_v0  ;;  %v669_v5 = vld [vmem:[%s788_s0 + $0x4] sm:$0xf]  ;;  %v24_v6 = vshrl.u32 %v14_v4, 16  ;;  %v27_v7 = vshll.u32 %v14_v4, 16  ;;  %559 = vmatprep.subr.bf16.mxu1 %v618_v3  ;;  %v621_v12 = vld [vmem:[%s787_s1 + $0x2c] sm:$0xff]   ;;  %v624_v24 = vld [vmem:[%s787_s1 + $0x34] sm:$0xff]  }
   0x4   :  { %575 = vmatprep.subr.bf16.mxu0 %v614_v1  ;;  %v511_v9 = vcombine.low %v14_v4, %v669_v5  ;;  %560 = vmatpush3.bf16.msra.mxu1 %v618_v3  ;;  %v16_v13 = vld [vmem:[%s788_s0 + $0xc] sm:$0xf]  ;;  %v617_v14 = vld [vmem:[%s787_s1 + $0x20] ss:$0 sps:$4 sm:$0xff]   ;;  %v37_v17 = vshrl.u32 %v669_v5, 16  ;;  %v33_v20 = vshll.u32 %v669_v5, 16  ;;  %vm710_vm6 = vmor %vm20_vm1, %vm21_vm2 }
   0x5   :  { %v26_v10 = vrot.slane %v24_v6, 4  ;;  %v29_v11 = vrot.slane %v27_v7, 5  ;;  %v48_v15 = vshrl.u32 %v16_v13, 16  ;;  %v51_v16 = vshll.u32 %v16_v13, 16  ;;  %561 = vmatprep.subr.bf16.mxu1 %v621_v12  ;;  %v689_v18 = vld [vmem:[%s788_s0 + $0x10] sm:$0xf]  ;;  %vm719_vm7 = vmor %vm79_vm4, %vm80_vm5 }
   0x6   :  { %583 = vmatprep.mubr.msk.bf16.mxu0 %vm148_vm0, %v511_v9  ;;  %v84_v21 = vrot.slane %v669_v5, 5  ;;  %v61_v25 = vshrl.u32 %v689_v18, 16  ;;  %v626_v26 = vld [vmem:[%s787_s1 + $0x3c] sm:$0xff]   ;;  %v35_v28 = vrot.slane %v33_v20, 5  ;;  %v250_v30 = vsel %vm155_vm3, %v617_v14, 0  ;;  %v620_v32 = vld [vmem:[%s787_s1 + $0x48] sm:$0xff]  }
   0x7   :  { %576 = vmatpush3.bf16.msra.mxu0 %v614_v1  ;;  %v30_v19 = vor.u32 %v29_v11, %v26_v10  ;;  %v50_v22 = vrot.slane %v48_v15, 4  ;;  %v53_v23 = vrot.slane %v51_v16, 5  ;;  %v18_v33 = vld [vmem:[%s788_s0 + $0x8] sm:$0x1]  ;;  %v39_v35 = vrot.slane %v37_v17, 4  ;;  %v623_v50 = vld [vmem:[%s787_s1 + $0x50] sm:$0xff]  }
   0x8   :  { %577 = vmatprep.subr.bf16.mxu0 %v615_v2  ;;  %562 = vmatpush3.bf16.msra.mxu1 %v621_v12  ;;  %v86_v31 = vrot.slane %v84_v21, 4  ;;  %v628_v36 = vld [vmem:[%s787_s1 + $0x44] ss:$0 sps:$4 sm:$0xff]   ;;  %v43_v37 = vshll.u32 %v18_v33, 16  ;;  %v87_v38 = vrot.slane %v18_v33, 5  ;;  %v512_v40 = vcombine.low %v16_v13, %v689_v18  ;;  %v625_v62 = vld [vmem:[%s787_s1 + $0x58] sm:$0xff]  }
   0x9   :  { %563 = vmatprep.subr.bf16.mxu1 %v624_v24  ;;  %v31_v27 = vrot.slane %v30_v19, 4  ;;  %v54_v29 = vor.u32 %v53_v23, %v50_v22  ;;  %v40_v41 = vor.u32 %v39_v35, %v35_v28  ;;  %v19_v42 = vld [vmem:[%s788_s0 + $0x14] sm:$0x1]  ;;  %v57_v43 = vshll.u32 %v689_v18, 16  ;;  %v71_v49 = vld [vmem:[%s788_s0] sm:$0xe] }
   0xa   :  { %v63_v44 = vrot.slane %v61_v25, 4  ;;  %v45_v46 = vrot.slane %v43_v37, 5  ;;  %v67_v48 = vshll.u32 %v19_v42, 16  ;;  %v491_v53 = vrot.slane %v71_v49, 9  ;;  %v627_v4 = vld [vmem:[%s787_s1 + $0x60] sm:$0xff]  }
   0xb   :  { %578 = vmatpush3.bf16.msra.mxu0 %v615_v2  ;;  %v36_v45 = vsel %vm710_vm6, %v31_v27, %v35_v28  ;;  %v55_v47 = vrot.slane %v54_v29, 4  ;;  %v41_v51 = vrot.slane %v40_v41, 4  ;;  %v59_v52 = vrot.slane %v57_v43, 5  ;;  %v72_v5 = vld [vmem:[%s788_s0 + $0xc] sm:$0xe]  ;;  %s630_s0 = smov 64  }
   0xc   :  { %579 = vmatprep.subr.bf16.mxu0 %v616_v8  ;;  %564 = vmatpush3.bf16.msra.mxu1 %v624_v24  ;;  %v88_v54 = vsel %vm719_vm7, %v86_v31, %v87_v38  ;;  %v157_v55 = vsel %vm155_vm3, %v628_v36, 0  ;;  %v69_v58 = vrot.slane %v67_v48, 5  ;;  %v85_v59 = vsel %vm719_vm7, %v491_v53, %v84_v21  ;;  %v629_v9 = vld [vmem:[%s787_s1 + $0x68] ss:$0 sps:$4 sm:$0xff]  }
   0xd   :  { %565 = vmatprep.subr.bf16.mxu1 %v626_v26  ;;  %v46_v56 = vsel %vm710_vm6, %v41_v51, %v45_v46  ;;  %v64_v57 = vor.u32 %v63_v44, %v59_v52  ;;  %v529_v61 = vcombine.low %v85_v59, %v88_v54  ;;  %v60_v63 = vsel %vm710_vm6, %v55_v47, %v59_v52 }
   0xe   :  { %v502_v60 = vcombine.low %v36_v45, %v46_v56  ;;  %v91_v2 = vrot.slane %v689_v18, 5  ;;  %v94_v6 = vrot.slane %v19_v42, 5  ;;  %v492_v7 = vrot.slane %v72_v5, 9 }
   0xf   :  { %580 = vmatpush3.bf16.msra.mxu0 %v616_v8  ;;  %v65_v0 = vrot.slane %v64_v57, 4  ;;  %v351_v12 = vsel %vm155_vm3, %v629_v9, 0 }
  0x10   :  { %610 = vmatprep.subr.msk.bf16.mxu0 %vm155_vm3, %v617_v14  ;;  %566 = vmatpush3.bf16.msra.mxu1 %v626_v26  ;;  %v93_v8 = vrot.slane %v91_v2, 4  ;;  %v92_v10 = vsel %vm719_vm7, %v492_v7, %v91_v2 }
  0x11   :  { %609 = vmatprep.subr.msk.bf16.mxu1 %vm155_vm3, %v628_v36  ;;  %569 = vmatprep.mubr.msk.bf16.mxu1 %vm148_vm0, %v502_v60  ;;  %v70_v1 = vsel %vm710_vm6, %v65_v0, %v69_v58 }
  0x12   :  { %v503_v3 = vcombine.low %v60_v63, %v70_v1  ;;  %v95_v11 = vsel %vm719_vm7, %v93_v8, %v94_v6 }
  0x13   :  { %582 = vmatpush3.bf16.msra.mxu0 %v250_v30  ;;  %v530_v13 = vcombine.low %v92_v10, %v95_v11 }
  0x14   :  { %587 = vmatprep.subr.bf16.mxu0 %v620_v32  ;;  %568 = vmatpush3.bf16.msra.mxu1 %v157_v55 }
  0x16   :  { %584 = vmatmul.mubr.msk.bf16.vlgmr.msra.gmra.mrb[0].mxu0 %vm148_vm0, %v512_v40 }
  0x17   :  { %588 = vmatpush3.bf16.msra.mxu0 %v620_v32  ;;  %597 = vmatprep.mubr.msk.bf16.mxu0 %vm148_vm0, %v529_v61 }
  0x18   :  { %589 = vmatprep.subr.bf16.mxu0 %v623_v50  ;;  %570 = vmatmul.mubr.msk.bf16.vlgmr.msra.gmra.mrb[0].mxu1 %vm148_vm0, %v503_v3 }
  0x1b   :  { %590 = vmatpush3.bf16.msra.mxu0 %v623_v50 }
  0x1c   :  { %591 = vmatprep.subr.bf16.mxu0 %v625_v62 }
  0x1f   :  { %592 = vmatpush3.bf16.msra.mxu0 %v625_v62 }
  0x20   :  { %593 = vmatprep.subr.bf16.mxu0 %v627_v4 }
  0x23   :  { %594 = vmatpush3.bf16.msra.mxu0 %v627_v4 }
  0x24   :  { %611 = vmatprep.subr.msk.bf16.mxu0 %vm155_vm3, %v629_v9 }
  0x27   :  { %596 = vmatpush3.bf16.msra.mxu0 %v351_v12 }
  0x2a   :  { %598 = vmatmul.mubr.msk.bf16.vlgmr.msra.gmra.mrb[0].mxu0 %vm148_vm0, %v530_v13 }
  0xeb   :  { %v571_v14 = vpop.f32.mrb[0].mxu1 }
  0xec   :  { %v193_v15 = vpop.f32.mrb[1].mxu1 }
  0xed   :  { %v572_v16 = vpop.f32.mrb[2].mxu1 }
  0xee   :  { %v196_v17 = vpop.f32.mrb[3].mxu1 }
  0xfd   :  { %v599_v18 = vpop.f32.mrb[0].mxu0 }
  0xfe   :  { %v601_v19 = vadd.f32 %v599_v18, %v571_v14  ;;  %v387_v20 = vpop.f32.mrb[1].mxu0 }
  0xff   :  { %v602_v21 = vadd.f32 %v387_v20, %v193_v15  ;;  %v600_v22 = vpop.f32.mrb[2].mxu0 }
 0x100   :  { %433 = vst [vmem:[#allocation2 + $0x10] sm:$0xff] %v601_v19  ;;  %v603_v23 = vadd.f32 %v600_v22, %v572_v16  ;;  %v390_v24 = vpop.f32.mrb[3].mxu0  ;;  %v417_v29 = vmul.f32 %v601_v19, %v601_v19 }
 0x101   :  { %431 = vst [vmem:[#allocation2] sm:$0xff] %v602_v21  ;;  %v604_v25 = vadd.f32 %v390_v24, %v196_v17  ;;  %v415_v26 = vmul.f32 %v602_v21, %v602_v21 }
 0x102   :  { %434 = vst [vmem:[#allocation2 + $0x18] sm:$0xff] %v603_v23  ;;  %v418_v32 = vmul.f32 %v603_v23, %v603_v23 }
 0x103   :  { %v406_v27 = vadd.f32 %v604_v25, %v602_v21  ;;  %v416_v28 = vmul.f32 %v604_v25, %v604_v25  ;;  %432 = vst [vmem:[#allocation2 + $0x8] sm:$0xff] %v604_v25 }
 0x105   :  { %v407_v30 = vadd.f32 %v601_v19, %v406_v27  ;;  %v419_v31 = vadd.f32 %v416_v28, %v415_v26 }
 0x107   :  { %v408_v33 = vadd.f32 %v603_v23, %v407_v30  ;;  %v420_v34 = vadd.f32 %v419_v31, %v417_v29 }
 0x109   :  { %v409_v35 = vrot.slane %v408_v33, 4  ;;  %v421_v36 = vadd.f32 %v420_v34, %v418_v32  ;;  %v441_v43 = vld [vmem:[#allocation2 + $0x11] ss:$2 sm:$0xff]  ;;  %v437_v44 = vld [vmem:[#allocation2 + $0x10] ss:$2 sm:$0xff] }
 0x10a   :  { %v439_v37 = vld [vmem:[#allocation2 + $0x1] ss:$2 sm:$0xff]  ;;  %v435_v38 = vld [vmem:[#allocation2] ss:$2 sm:$0xff] }
 0x10b   :  { %v410_v39 = vadd.f32 %v409_v35, %v408_v33  ;;  %v422_v40 = vrot.slane %v421_v36, 4  ;;  %454 = vrot.lane.b32.xlu1 %v439_v37, %s630_s0  ;;  %444 = vrot.lane.b32.xlu0 %v435_v38, %s630_s0 }
 0x10d   :  { %v411_v41 = vrot.slane %v410_v39, 2  ;;  %v423_v42 = vadd.f32 %v422_v40, %v421_v36 }
 0x10f   :  { %v412_v45 = vadd.f32 %v411_v41, %v410_v39  ;;  %v424_v46 = vrot.slane %v423_v42, 2  ;;  %456 = vrot.lane.b32.xlu1 %v441_v43, %s630_s0  ;;  %446 = vrot.lane.b32.xlu0 %v437_v44, %s630_s0 }
 0x111   :  { %v413_v47 = vrot.slane %v412_v45, 1  ;;  %v425_v48 = vadd.f32 %v424_v46, %v423_v42 }
 0x113   :  { %v426_v49 = vrot.slane %v425_v48, 1  ;;  %v414_v50 = vadd.f32 %v413_v47, %v412_v45 }
 0x115   :  { %v427_v51 = vadd.f32 %v426_v49, %v425_v48 }
 0x117   :  { %v429_v52 = vsel %vm428_vm8, %v414_v50, %v427_v51 }
 0x118   :  { %430 = vst [vmem:[%s789_s3] sm:$0x3] %v429_v52 }
 0x17d   :  { %v455_v53 = vpop.permute.xlu1 %454  ;;  %v445_v54 = vpop.permute.xlu0 %444 }
 0x17e   :  { %v460_v55 = vmax.f32 %v439_v37, %v455_v53  ;;  %v466_v56 = vmin.f32 %v439_v37, %v455_v53  ;;  %v450_v57 = vmax.f32 %v435_v38, %v445_v54  ;;  %v464_v58 = vmin.f32 %v435_v38, %v445_v54 }
 0x180   :  { %v462_v59 = vmax.f32 %v450_v57, %v460_v55  ;;  %v468_v60 = vmin.f32 %v464_v58, %v466_v56 }
 0x181   :  { %v457_v61 = vpop.permute.xlu1 %456  ;;  %v447_v62 = vpop.permute.xlu0 %446 }
 0x182   :  { %v467_v63 = vmin.f32 %v441_v43, %v457_v61  ;;  %v465_v0 = vmin.f32 %v437_v44, %v447_v62  ;;  %472 = vrot.lane.b32.xlu0 %v468_v60, %s630_s0  ;;  %v461_v2 = vmax.f32 %v441_v43, %v457_v61  ;;  %v451_v3 = vmax.f32 %v437_v44, %v447_v62 }
 0x184   :  { %v469_v1 = vmin.f32 %v465_v0, %v467_v63  ;;  %v463_v6 = vmax.f32 %v451_v3, %v461_v2 }
 0x186   :  { %474 = vrot.lane.b32.xlu1 %v469_v1, %s630_s0 }
 0x1f4   :  { %v473_v4 = vpop.permute.xlu0 %472 }
 0x1f5   :  { %v479_v5 = vsel %vm478_vm9, %v462_v59, %v473_v4 }
 0x1f6   :  { %481 = vst [vmem:[%s790_s2] sm:$0xff] %v479_v5 }
 0x1f8   :  { %v475_v7 = vpop.permute.xlu1 %474 }
 0x1f9   :  { %v480_v8 = vsel %vm478_vm9, %v463_v6, %v475_v7 }
 0x1fa   :  { %482 = vst [vmem:[%s790_s2 + $0x8] sm:$0xff] %v480_v8 }

</bundles_post_ra>
